<compile_context>
chip_gen: v7x
topology: tpu7x:2x2x1
jax: 0.10.0
libtpu: 0.0.40
codegen_flags: <defaults>
</compile_context>

<pallas_src>
import jax
import jax.numpy as jnp
import numpy as np
from jax.experimental import pallas as pl
from jax.experimental.pallas import tpu as pltpu


def _sbir_kernel(sk_ref, img_ref, w_ref, p_ref, sk_out_ref, img_out_ref):
    """One batch-tile of the SBIR wrapper forward.

    sk_ref  : (TB, De)  sketch encoder output (sketch_projection is Identity)
    img_ref : (TB, Di)  image encoder CLS features
    w_ref   : (Di, De)  image_projection Linear weight (stored as x @ W)
    p_ref   : (3,  De)  packed f32 params: row 0 = bias, 1 = LN gamma, 2 = LN beta
    """
    f32 = jnp.float32
    l2_eps_sq = 1e-24   # (torch F.normalize eps)^2; max(sqrt(s),eps)==sqrt(max(s,eps^2))
    ln_eps = 1e-5       # nn.LayerNorm default eps

    # ---- sketch branch: Identity projection + L2 normalize ----------------
    sk = sk_ref[...].astype(f32)
    sk_inv = jax.lax.rsqrt(
        jnp.maximum(jnp.sum(sk * sk, axis=-1, keepdims=True), l2_eps_sq))
    sk_out_ref[...] = (sk * sk_inv).astype(sk_out_ref.dtype)

    # ---- image branch: Linear -> ReLU -> (Dropout eval) -> LayerNorm ------
    # MXU matmul in the operands' native (normalized-at-boundary) dtype,
    # f32 accumulation.
    y = jnp.dot(img_ref[...], w_ref[...], preferred_element_type=f32)

    bias = p_ref[0:1, :]    # (1, De), already f32
    gamma = p_ref[1:2, :]
    beta = p_ref[2:3, :]

    y = jnp.maximum(y + bias, 0.0)       # ReLU; Dropout is identity in eval

    # LayerNorm in fp32 (fp16-safe LN from the module), two-pass stats.
    mean = jnp.mean(y, axis=-1, keepdims=True)
    cent = y - mean
    var = jnp.mean(cent * cent, axis=-1, keepdims=True)
    y = cent * jax.lax.rsqrt(var + ln_eps) * gamma + beta

    # ---- L2 normalize ------------------------------------------------------
    img_inv = jax.lax.rsqrt(
        jnp.maximum(jnp.sum(y * y, axis=-1, keepdims=True), l2_eps_sq))
    img_out_ref[...] = (y * img_inv).astype(img_out_ref.dtype)


def _vmem_capacity_bytes():
    """Physical VMEM of the current chip; conservative fallback (v7x = 64 MiB)."""
    try:
        info = pltpu.get_tpu_info()
        cap = getattr(info, "vmem_capacity_bytes", None)
        if cap:
            return int(cap)
    except Exception:
        pass
    return 64 << 20


def _choose_batch_tile(B, pack, per_row_bytes, fixed_bytes):
    """Batch tile: packing-aligned, <=512 rows, fits a conservative VMEM budget,
    and leaves >=4 grid steps when B allows (>=2 per TensorCore on v7x)."""
    if B <= pack:
        return B
    cap = _vmem_capacity_bytes()
    budget = min(cap // 4, 16 << 20)          # headroom on every generation
    rows_fit = max(pack, int((budget - fixed_bytes) // max(per_row_bytes, 1)))
    target = min(512, rows_fit, max(pack, B // 4))
    target = max(pack, (target // pack) * pack)
    for t in range(target, pack - 1, -pack):   # prefer a divisor of B
        if B % t == 0:
            return t
    return target                              # ragged B: caller zero-pads


def _make_call(Bp, De, Di, batch_tile, sk_dtype, img_dtype, vmem_limit,
               single_buffer_consts):
    """Build the pallas_call for a padded batch of Bp rows."""
    const_kw = {}
    if single_buffer_consts and hasattr(pl, "Buffered"):
        # W and the packed params have a constant index_map; one VMEM copy is
        # enough (saves Di*De*itemsize of double-buffer footprint).
        const_kw = dict(pipeline_mode=pl.Buffered(1))

    in_specs = [
        pl.BlockSpec((batch_tile, De), lambda i: (i, 0)),   # sketch feats
        pl.BlockSpec((batch_tile, Di), lambda i: (i, 0)),   # image feats
        pl.BlockSpec((Di, De), lambda i: (0, 0), **const_kw),   # Linear W
        pl.BlockSpec((3, De), lambda i: (0, 0), **const_kw),    # bias/gamma/beta
    ]
    out_specs = [
        pl.BlockSpec((batch_tile, De), lambda i: (i, 0)),
        pl.BlockSpec((batch_tile, De), lambda i: (i, 0)),
    ]
    return pl.pallas_call(
        _sbir_kernel,
        out_shape=(
            jax.ShapeDtypeStruct((Bp, De), sk_dtype),
            jax.ShapeDtypeStruct((Bp, De), img_dtype),
        ),
        grid_spec=pltpu.PrefetchScalarGridSpec(
            num_scalar_prefetch=0,
            grid=(Bp // batch_tile,),
            in_specs=in_specs,
            out_specs=out_specs,
        ),
        # TODO(synk): on v7x, pltpu.CORE_PARALLEL / pl.core_map would shard the
        # batch axis across both TensorCores explicitly; plain "parallel" with
        # >=4 grid steps is the portable default used here.
        compiler_params=pltpu.CompilerParams(
            dimension_semantics=("parallel",),
            vmem_limit_bytes=vmem_limit),
    )


def sbir_forward(sketch_feats, image_feats, w, b, gamma, beta, logit_scale,
                 batch_tile=None):
    """Pallas implementation of SBIRModelWrapper.forward (post-backbone part).

    Returns (sketch_features, image_features, logit_scale.exp()).
    Outputs keep the dtype of their respective feature inputs (bf16 in -> bf16
    out, halving HBM traffic on this bandwidth-bound kernel).
    """
    B, De = sketch_feats.shape
    Di = image_feats.shape[1]

    sk_isize = jnp.dtype(sketch_feats.dtype).itemsize
    img_isize = jnp.dtype(image_feats.dtype).itemsize
    pack = max(8, 32 // min(sk_isize, img_isize))  # sublane packing (f32/bf16/int8)

    # Bytes streamed per batch row (double-buffered inputs + outputs) and the
    # fixed (weight + packed-params) footprint, used for VMEM-aware tiling.
    per_row = (2 * (De * sk_isize + Di * img_isize)
               + 2 * De * (sk_isize + img_isize))
    fixed = Di * De * img_isize + 8 * De * 4

    if batch_tile is None:
        batch_tile = _choose_batch_tile(B, pack, per_row, fixed)
    else:
        if batch_tile != B and batch_tile % pack != 0:
            raise ValueError(
                f"batch_tile must equal B or be a multiple of {pack} "
                f"(sublane packing for the given dtypes)")

    # Normalize matmul dtypes at the boundary: W matches the image features, so
    # bf16 features give a MXU-native bf16xbf16 dot (f32 accumulation).
    w = w.astype(image_feats.dtype)

    # Pack Linear bias / LN gamma / LN beta into one (3, De) f32 block:
    # one small DMA + one padded VMEM tile instead of three.
    params = jnp.stack([
        b.astype(jnp.float32),
        gamma.astype(jnp.float32),
        beta.astype(jnp.float32),
    ], axis=0)

    # Ragged batch: zero-pad to a tile multiple (rows are independent; padded
    # rows are sliced off below and produce finite zeros inside the kernel).
    n_blocks = pl.cdiv(B, batch_tile)
    Bp = n_blocks * batch_tile
    sk_in, img_in = sketch_feats, image_feats
    if Bp != B:
        sk_in = jnp.pad(sk_in, ((0, Bp - B), (0, 0)))
        img_in = jnp.pad(img_in, ((0, Bp - B), (0, 0)))

    # Explicit VMEM limit: estimated usage * 2 headroom, clamped to the chip.
    cap = _vmem_capacity_bytes()
    usage = (2 * batch_tile * (De * sk_isize + Di * img_isize)
             + 2 * batch_tile * De * (sk_isize + img_isize)
             + 2 * Di * De * img_isize
             + 2 * 8 * De * 4)
    vmem_limit = int(min(cap, max(32 << 20, 2 * usage)))

    try:
        call = _make_call(Bp, De, Di, batch_tile, sketch_feats.dtype,
                          image_feats.dtype, vmem_limit,
                          single_buffer_consts=True)
        sk_out, img_out = call(sk_in, img_in, w, params)
    except Exception:
        # Fallback if this JAX build rejects pipeline_mode=pl.Buffered(1).
        call = _make_call(Bp, De, Di, batch_tile, sketch_feats.dtype,
                          image_feats.dtype, vmem_limit,
                          single_buffer_consts=False)
        sk_out, img_out = call(sk_in, img_in, w, params)

    if Bp != B:
        sk_out = sk_out[:B]
        img_out = img_out[:B]
    return sk_out, img_out, jnp.exp(logit_scale)


def _reference(sketch_feats, image_feats, w, b, gamma, beta, logit_scale):
    """Plain-JAX reference matching PyTorch semantics (f32)."""
    sk = sketch_feats.astype(jnp.float32)
    sk = sk / jnp.maximum(jnp.linalg.norm(sk, axis=1, keepdims=True), 1e-12)

    y = image_feats.astype(jnp.float32) @ w.astype(jnp.float32) + b
    y = jnp.maximum(y, 0.0)
    mean = y.mean(axis=-1, keepdims=True)
    var = ((y - mean) ** 2).mean(axis=-1, keepdims=True)
    y = (y - mean) / jnp.sqrt(var + 1e-5) * gamma + beta
    y = y / jnp.maximum(jnp.linalg.norm(y, axis=1, keepdims=True), 1e-12)
    return sk, y, jnp.exp(logit_scale)


if __name__ == "__main__":
    # Small, TPU-friendly shapes consistent with the module:
    #   embed_dim (De) = 128, image_feat_dim (Di) = 256, batch = 32.
    B, De, Di = 32, 128, 256
    temperature = 0.07

    key = jax.random.PRNGKey(0)
    k_sk, k_img, k_w = jax.random.split(key, 3)

    # Stand-ins for the (external) encoder outputs.
    sketch_feats = jax.random.normal(k_sk, (B, De), dtype=jnp.float32)
    image_feats = jax.random.normal(k_img, (B, Di), dtype=jnp.float32)

    # image_projection Linear: xavier_uniform_ weight, zero bias.
    limit = float(np.sqrt(6.0 / (Di + De)))
    w = jax.random.uniform(k_w, (Di, De), dtype=jnp.float32,
                           minval=-limit, maxval=limit)
    b = jnp.zeros((De,), jnp.float32)
    # LayerNorm: weight = 1, bias = 0 (nn.LayerNorm default init).
    gamma = jnp.ones((De,), jnp.float32)
    beta = jnp.zeros((De,), jnp.float32)
    # logit_scale = log(1 / temperature)
    logit_scale = jnp.asarray(np.log(1.0 / temperature), jnp.float32)

    # ---- f32, aligned batch -------------------------------------------------
    sk_out, img_out, scale = sbir_forward(
        sketch_feats, image_feats, w, b, gamma, beta, logit_scale)
    jax.block_until_ready((sk_out, img_out, scale))

    sk_ref, img_ref, scale_ref = _reference(
        sketch_feats, image_feats, w, b, gamma, beta, logit_scale)

    np.testing.assert_allclose(np.asarray(sk_out), np.asarray(sk_ref),
                               rtol=1e-5, atol=1e-5)
    np.testing.assert_allclose(np.asarray(img_out), np.asarray(img_ref),
                               rtol=1e-5, atol=1e-5)
    np.testing.assert_allclose(np.asarray(scale), np.asarray(scale_ref),
                               rtol=1e-6, atol=1e-6)

    # ---- f32, ragged batch (exercises zero-pad path) ------------------------
    Br = 30
    sk_r, img_r, _ = sbir_forward(
        sketch_feats[:Br], image_feats[:Br], w, b, gamma, beta, logit_scale)
    jax.block_until_ready((sk_r, img_r))
    sk_rr, img_rr, _ = _reference(
        sketch_feats[:Br], image_feats[:Br], w, b, gamma, beta, logit_scale)
    np.testing.assert_allclose(np.asarray(sk_r), np.asarray(sk_rr),
                               rtol=1e-5, atol=1e-5)
    np.testing.assert_allclose(np.asarray(img_r), np.asarray(img_rr),
                               rtol=1e-5, atol=1e-5)

    # ---- bf16 streaming path (halves HBM traffic; MXU-native bf16 matmul) ---
    sk_b, img_b, _ = sbir_forward(
        sketch_feats.astype(jnp.bfloat16), image_feats.astype(jnp.bfloat16),
        w, b, gamma, beta, logit_scale)
    jax.block_until_ready((sk_b, img_b))
    np.testing.assert_allclose(np.asarray(sk_b.astype(jnp.float32)),
                               np.asarray(sk_ref), rtol=5e-2, atol=2e-2)
    np.testing.assert_allclose(np.asarray(img_b.astype(jnp.float32)),
                               np.asarray(img_ref), rtol=5e-2, atol=2e-2)

    print("KERNEL_OK")
</pallas_src>

<mosaic_0001>
module attributes {stable_mosaic.version = 11 : i64} {
  func.func @_sbir_kernel(%arg0: i32, %arg1: memref<8x128xf32, #tpu.memory_space<vmem>>, %arg2: memref<8x256xf32, #tpu.memory_space<vmem>>, %arg3: memref<256x128xf32, #tpu.memory_space<vmem>>, %arg4: memref<3x128xf32, #tpu.memory_space<vmem>>, %arg5: memref<8x128xf32, #tpu.memory_space<vmem>>, %arg6: memref<8x128xf32, #tpu.memory_space<vmem>>) attributes {dimension_semantics = [#tpu.dimension_semantics<parallel>], iteration_bounds = array<i64: 4>, scalar_prefetch = 0 : i64, scratch_operands = 0 : i64, tpu.core_type = #tpu.core_type<tc>, window_params = [{transform_indices = @transform_0, window_bounds = array<i64: 8, 128>}, {transform_indices = @transform_1, window_bounds = array<i64: 8, 256>}, {pipeline_mode = #tpu.pipeline_mode<synchronous>, transform_indices = @transform_2, window_bounds = array<i64: 256, 128>}, {pipeline_mode = #tpu.pipeline_mode<synchronous>, transform_indices = @transform_3, window_bounds = array<i64: 3, 128>}, {transform_indices = @transform_4, window_bounds = array<i64: 8, 128>}, {transform_indices = @transform_5, window_bounds = array<i64: 8, 128>}]} {
    %c0 = arith.constant 0 : index
    %c0_0 = arith.constant 0 : index
    %0 = vector.load %arg1[%c0, %c0_0] : memref<8x128xf32, #tpu.memory_space<vmem>>, vector<8x128xf32>
    %1 = arith.mulf %0, %0 : vector<8x128xf32>
    %cst = arith.constant dense<0.000000e+00> : vector<8xf32>
    %2 = vector.multi_reduction <add>, %1, %cst [1] : vector<8x128xf32> to vector<8xf32>
    %3 = vector.shape_cast %2 : vector<8xf32> to vector<8x1xf32>
    %cst_1 = arith.constant 1.000000e-24 : f32
    %4 = vector.broadcast %cst_1 : f32 to vector<8x1xf32>
    %5 = arith.maximumf %3, %4 : vector<8x1xf32>
    %6 = math.rsqrt %5 : vector<8x1xf32>
    %7 = vector.broadcast %6 : vector<8x1xf32> to vector<8x128xf32>
    %8 = arith.mulf %0, %7 : vector<8x128xf32>
    %c0_2 = arith.constant 0 : index
    %c0_3 = arith.constant 0 : index
    %9 = vector.load %arg5[%c0_2, %c0_3] : memref<8x128xf32, #tpu.memory_space<vmem>>, vector<8x128xf32>
    tpu.vector_store %arg5[%c0_2, %c0_3], %8 {strides = array<i32>} : memref<8x128xf32, #tpu.memory_space<vmem>>, vector<8x128xf32>,
    %c0_4 = arith.constant 0 : index
    %c0_5 = arith.constant 0 : index
    %10 = vector.load %arg2[%c0_4, %c0_5] : memref<8x256xf32, #tpu.memory_space<vmem>>, vector<8x256xf32>
    %c0_6 = arith.constant 0 : index
    %c0_7 = arith.constant 0 : index
    %11 = vector.load %arg3[%c0_6, %c0_7] : memref<256x128xf32, #tpu.memory_space<vmem>>, vector<256x128xf32>
    %cst_8 = arith.constant dense<0.000000e+00> : vector<8x128xf32>
    %12 = tpu.matmul %10, %11, %cst_8 {dimension_numbers = #tpu.dot_dimension_numbers<[1], [0], [0], [1], [0, 0, 1, 1], [], []>} : vector<8x256xf32>, vector<256x128xf32>, vector<8x128xf32> -> vector<8x128xf32>
    %c0_9 = arith.constant 0 : index
    %c0_10 = arith.constant 0 : index
    %13 = vector.load %arg4[%c0_9, %c0_10] : memref<3x128xf32, #tpu.memory_space<vmem>>, vector<1x128xf32>
    %c1 = arith.constant 1 : index
    %c0_11 = arith.constant 0 : index
    %14 = vector.load %arg4[%c1, %c0_11] : memref<3x128xf32, #tpu.memory_space<vmem>>, vector<1x128xf32>
    %c2 = arith.constant 2 : index
    %c0_12 = arith.constant 0 : index
    %15 = vector.load %arg4[%c2, %c0_12] : memref<3x128xf32, #tpu.memory_space<vmem>>, vector<1x128xf32>
    %16 = vector.broadcast %13 : vector<1x128xf32> to vector<8x128xf32>
    %17 = arith.addf %12, %16 : vector<8x128xf32>
    %cst_13 = arith.constant 0.000000e+00 : f32
    %18 = vector.broadcast %cst_13 : f32 to vector<8x128xf32>
    %19 = arith.maximumf %17, %18 : vector<8x128xf32>
    %cst_14 = arith.constant dense<0.000000e+00> : vector<8xf32>
    %20 = vector.multi_reduction <add>, %19, %cst_14 [1] : vector<8x128xf32> to vector<8xf32>
    %21 = vector.shape_cast %20 : vector<8xf32> to vector<8x1xf32>
    %cst_15 = arith.constant 1.280000e+02 : f32
    %22 = vector.broadcast %cst_15 : f32 to vector<8x1xf32>
    %23 = arith.divf %21, %22 : vector<8x1xf32>
    %24 = vector.broadcast %23 : vector<8x1xf32> to vector<8x128xf32>
    %25 = arith.subf %19, %24 : vector<8x128xf32>
    %26 = arith.mulf %25, %25 : vector<8x128xf32>
    %cst_16 = arith.constant dense<0.000000e+00> : vector<8xf32>
    %27 = vector.multi_reduction <add>, %26, %cst_16 [1] : vector<8x128xf32> to vector<8xf32>
    %28 = vector.shape_cast %27 : vector<8xf32> to vector<8x1xf32>
    %cst_17 = arith.constant 1.280000e+02 : f32
    %29 = vector.broadcast %cst_17 : f32 to vector<8x1xf32>
    %30 = arith.divf %28, %29 : vector<8x1xf32>
    %cst_18 = arith.constant 9.99999974E-6 : f32
    %31 = vector.broadcast %cst_18 : f32 to vector<8x1xf32>
    %32 = arith.addf %30, %31 : vector<8x1xf32>
    %33 = math.rsqrt %32 : vector<8x1xf32>
    %34 = vector.broadcast %33 : vector<8x1xf32> to vector<8x128xf32>
    %35 = arith.mulf %25, %34 : vector<8x128xf32>
    %36 = vector.broadcast %14 : vector<1x128xf32> to vector<8x128xf32>
    %37 = arith.mulf %35, %36 : vector<8x128xf32>
    %38 = vector.broadcast %15 : vector<1x128xf32> to vector<8x128xf32>
    %39 = arith.addf %37, %38 : vector<8x128xf32>
    %40 = arith.mulf %39, %39 : vector<8x128xf32>
    %cst_19 = arith.constant dense<0.000000e+00> : vector<8xf32>
    %41 = vector.multi_reduction <add>, %40, %cst_19 [1] : vector<8x128xf32> to vector<8xf32>
    %42 = vector.shape_cast %41 : vector<8xf32> to vector<8x1xf32>
    %cst_20 = arith.constant 1.000000e-24 : f32
    %43 = vector.broadcast %cst_20 : f32 to vector<8x1xf32>
    %44 = arith.maximumf %42, %43 : vector<8x1xf32>
    %45 = math.rsqrt %44 : vector<8x1xf32>
    %46 = vector.broadcast %45 : vector<8x1xf32> to vector<8x128xf32>
    %47 = arith.mulf %39, %46 : vector<8x128xf32>
    %c0_21 = arith.constant 0 : index
    %c0_22 = arith.constant 0 : index
    %48 = vector.load %arg6[%c0_21, %c0_22] : memref<8x128xf32, #tpu.memory_space<vmem>>, vector<8x128xf32>
    tpu.vector_store %arg6[%c0_21, %c0_22], %47 {strides = array<i32>} : memref<8x128xf32, #tpu.memory_space<vmem>>, vector<8x128xf32>,
    return
  }
  func.func @transform_0(%arg0: i32) -> (i32, i32) {
    %c0_i32 = arith.constant 0 : i32
    %c0_i32_0 = arith.constant 0 : i32
    return %arg0, %c0_i32 : i32, i32
  }
  func.func @transform_1(%arg0: i32) -> (i32, i32) {
    %c0_i32 = arith.constant 0 : i32
    %c0_i32_0 = arith.constant 0 : i32
    return %arg0, %c0_i32 : i32, i32
  }
  func.func @transform_2(%arg0: i32) -> (i32, i32) {
    %c0_i32 = arith.constant 0 : i32
    %c0_i32_0 = arith.constant 0 : i32
    %c0_i32_1 = arith.constant 0 : i32
    return %c0_i32, %c0_i32_0 : i32, i32
  }
  func.func @transform_3(%arg0: i32) -> (i32, i32) {
    %c0_i32 = arith.constant 0 : i32
    %c0_i32_0 = arith.constant 0 : i32
    %c0_i32_1 = arith.constant 0 : i32
    return %c0_i32, %c0_i32_0 : i32, i32
  }
  func.func @transform_4(%arg0: i32) -> (i32, i32) {
    %c0_i32 = arith.constant 0 : i32
    %c0_i32_0 = arith.constant 0 : i32
    return %arg0, %c0_i32 : i32, i32
  }
  func.func @transform_5(%arg0: i32) -> (i32, i32) {
    %c0_i32 = arith.constant 0 : i32
    %c0_i32_0 = arith.constant 0 : i32
    return %arg0, %c0_i32 : i32, i32
  }
}

module attributes {stable_mosaic.version = 11 : i64} {
  func.func @_sbir_kernel(%arg0: i32, %arg1: memref<8x128xf32, #tpu.memory_space<vmem>>, %arg2: memref<8x256xf32, #tpu.memory_space<vmem>>, %arg3: memref<256x128xf32, #tpu.memory_space<vmem>>, %arg4: memref<3x128xf32, #tpu.memory_space<vmem>>, %arg5: memref<8x128xf32, #tpu.memory_space<vmem>>, %arg6: memref<8x128xf32, #tpu.memory_space<vmem>>) attributes {dimension_semantics = [#tpu.dimension_semantics<parallel>], iteration_bounds = array<i64: 4>, scalar_prefetch = 0 : i64, scratch_operands = 0 : i64, tpu.core_type = #tpu.core_type<tc>, window_params = [{transform_indices = @transform_0, window_bounds = array<i64: 8, 128>}, {transform_indices = @transform_1, window_bounds = array<i64: 8, 256>}, {pipeline_mode = #tpu.pipeline_mode<synchronous>, transform_indices = @transform_2, window_bounds = array<i64: 256, 128>}, {pipeline_mode = #tpu.pipeline_mode<synchronous>, transform_indices = @transform_3, window_bounds = array<i64: 3, 128>}, {transform_indices = @transform_4, window_bounds = array<i64: 8, 128>}, {transform_indices = @transform_5, window_bounds = array<i64: 8, 128>}]} {
    %c0 = arith.constant 0 : index
    %c0_0 = arith.constant 0 : index
    %0 = vector.load %arg1[%c0, %c0_0] : memref<8x128xf32, #tpu.memory_space<vmem>>, vector<8x128xf32>
    %1 = arith.mulf %0, %0 : vector<8x128xf32>
    %cst = arith.constant dense<0.000000e+00> : vector<8xf32>
    %2 = vector.multi_reduction <add>, %1, %cst [1] : vector<8x128xf32> to vector<8xf32>
    %3 = vector.shape_cast %2 : vector<8xf32> to vector<8x1xf32>
    %cst_1 = arith.constant 1.000000e-24 : f32
    %4 = vector.broadcast %cst_1 : f32 to vector<8x1xf32>
    %5 = arith.maximumf %3, %4 : vector<8x1xf32>
    %6 = math.rsqrt %5 : vector<8x1xf32>
    %7 = vector.broadcast %6 : vector<8x1xf32> to vector<8x128xf32>
    %8 = arith.mulf %0, %7 : vector<8x128xf32>
    %c0_2 = arith.constant 0 : index
    %c0_3 = arith.constant 0 : index
    %9 = vector.load %arg5[%c0_2, %c0_3] : memref<8x128xf32, #tpu.memory_space<vmem>>, vector<8x128xf32>
    tpu.vector_store %arg5[%c0_2, %c0_3], %8 {strides = array<i32>} : memref<8x128xf32, #tpu.memory_space<vmem>>, vector<8x128xf32>,
    %c0_4 = arith.constant 0 : index
    %c0_5 = arith.constant 0 : index
    %10 = vector.load %arg2[%c0_4, %c0_5] : memref<8x256xf32, #tpu.memory_space<vmem>>, vector<8x256xf32>
    %c0_6 = arith.constant 0 : index
    %c0_7 = arith.constant 0 : index
    %11 = vector.load %arg3[%c0_6, %c0_7] : memref<256x128xf32, #tpu.memory_space<vmem>>, vector<256x128xf32>
    %cst_8 = arith.constant dense<0.000000e+00> : vector<8x128xf32>
    %12 = tpu.matmul %10, %11, %cst_8 {dimension_numbers = #tpu.dot_dimension_numbers<[1], [0], [0], [1], [0, 0, 1, 1], [], []>} : vector<8x256xf32>, vector<256x128xf32>, vector<8x128xf32> -> vector<8x128xf32>
    %c0_9 = arith.constant 0 : index
    %c0_10 = arith.constant 0 : index
    %13 = vector.load %arg4[%c0_9, %c0_10] : memref<3x128xf32, #tpu.memory_space<vmem>>, vector<1x128xf32>
    %c1 = arith.constant 1 : index
    %c0_11 = arith.constant 0 : index
    %14 = vector.load %arg4[%c1, %c0_11] : memref<3x128xf32, #tpu.memory_space<vmem>>, vector<1x128xf32>
    %c2 = arith.constant 2 : index
    %c0_12 = arith.constant 0 : index
    %15 = vector.load %arg4[%c2, %c0_12] : memref<3x128xf32, #tpu.memory_space<vmem>>, vector<1x128xf32>
    %16 = vector.broadcast %13 : vector<1x128xf32> to vector<8x128xf32>
    %17 = arith.addf %12, %16 : vector<8x128xf32>
    %cst_13 = arith.constant 0.000000e+00 : f32
    %18 = vector.broadcast %cst_13 : f32 to vector<8x128xf32>
    %19 = arith.maximumf %17, %18 : vector<8x128xf32>
    %cst_14 = arith.constant dense<0.000000e+00> : vector<8xf32>
    %20 = vector.multi_reduction <add>, %19, %cst_14 [1] : vector<8x128xf32> to vector<8xf32>
    %21 = vector.shape_cast %20 : vector<8xf32> to vector<8x1xf32>
    %cst_15 = arith.constant 1.280000e+02 : f32
    %22 = vector.broadcast %cst_15 : f32 to vector<8x1xf32>
    %23 = arith.divf %21, %22 : vector<8x1xf32>
    %24 = vector.broadcast %23 : vector<8x1xf32> to vector<8x128xf32>
    %25 = arith.subf %19, %24 : vector<8x128xf32>
    %26 = arith.mulf %25, %25 : vector<8x128xf32>
    %cst_16 = arith.constant dense<0.000000e+00> : vector<8xf32>
    %27 = vector.multi_reduction <add>, %26, %cst_16 [1] : vector<8x128xf32> to vector<8xf32>
    %28 = vector.shape_cast %27 : vector<8xf32> to vector<8x1xf32>
    %cst_17 = arith.constant 1.280000e+02 : f32
    %29 = vector.broadcast %cst_17 : f32 to vector<8x1xf32>
    %30 = arith.divf %28, %29 : vector<8x1xf32>
    %cst_18 = arith.constant 9.99999974E-6 : f32
    %31 = vector.broadcast %cst_18 : f32 to vector<8x1xf32>
    %32 = arith.addf %30, %31 : vector<8x1xf32>
    %33 = math.rsqrt %32 : vector<8x1xf32>
    %34 = vector.broadcast %33 : vector<8x1xf32> to vector<8x128xf32>
    %35 = arith.mulf %25, %34 : vector<8x128xf32>
    %36 = vector.broadcast %14 : vector<1x128xf32> to vector<8x128xf32>
    %37 = arith.mulf %35, %36 : vector<8x128xf32>
    %38 = vector.broadcast %15 : vector<1x128xf32> to vector<8x128xf32>
    %39 = arith.addf %37, %38 : vector<8x128xf32>
    %40 = arith.mulf %39, %39 : vector<8x128xf32>
    %cst_19 = arith.constant dense<0.000000e+00> : vector<8xf32>
    %41 = vector.multi_reduction <add>, %40, %cst_19 [1] : vector<8x128xf32> to vector<8xf32>
    %42 = vector.shape_cast %41 : vector<8xf32> to vector<8x1xf32>
    %cst_20 = arith.constant 1.000000e-24 : f32
    %43 = vector.broadcast %cst_20 : f32 to vector<8x1xf32>
    %44 = arith.maximumf %42, %43 : vector<8x1xf32>
    %45 = math.rsqrt %44 : vector<8x1xf32>
    %46 = vector.broadcast %45 : vector<8x1xf32> to vector<8x128xf32>
    %47 = arith.mulf %39, %46 : vector<8x128xf32>
    %c0_21 = arith.constant 0 : index
    %c0_22 = arith.constant 0 : index
    %48 = vector.load %arg6[%c0_21, %c0_22] : memref<8x128xf32, #tpu.memory_space<vmem>>, vector<8x128xf32>
    tpu.vector_store %arg6[%c0_21, %c0_22], %47 {strides = array<i32>} : memref<8x128xf32, #tpu.memory_space<vmem>>, vector<8x128xf32>,
    return
  }
  func.func @transform_0(%arg0: i32) -> (i32, i32) {
    %c0_i32 = arith.constant 0 : i32
    %c0_i32_0 = arith.constant 0 : i32
    return %arg0, %c0_i32 : i32, i32
  }
  func.func @transform_1(%arg0: i32) -> (i32, i32) {
    %c0_i32 = arith.constant 0 : i32
    %c0_i32_0 = arith.constant 0 : i32
    return %arg0, %c0_i32 : i32, i32
  }
  func.func @transform_2(%arg0: i32) -> (i32, i32) {
    %c0_i32 = arith.constant 0 : i32
    %c0_i32_0 = arith.constant 0 : i32
    %c0_i32_1 = arith.constant 0 : i32
    return %c0_i32, %c0_i32_0 : i32, i32
  }
  func.func @transform_3(%arg0: i32) -> (i32, i32) {
    %c0_i32 = arith.constant 0 : i32
    %c0_i32_0 = arith.constant 0 : i32
    %c0_i32_1 = arith.constant 0 : i32
    return %c0_i32, %c0_i32_0 : i32, i32
  }
  func.func @transform_4(%arg0: i32) -> (i32, i32) {
    %c0_i32 = arith.constant 0 : i32
    %c0_i32_0 = arith.constant 0 : i32
    return %arg0, %c0_i32 : i32, i32
  }
  func.func @transform_5(%arg0: i32) -> (i32, i32) {
    %c0_i32 = arith.constant 0 : i32
    %c0_i32_0 = arith.constant 0 : i32
    return %arg0, %c0_i32 : i32, i32
  }
}

</mosaic_0001>

<bundles_post_ra>
// kernel: tpu_custom_call.1
= control target key start
LH: loop header
LB: loop body
LE: loop exit
PB: predicated region body
PF: predicated region fallthrough
CT: control target
= control target key end

     0   :  { %s1291_s0 = inlined_call_operand.hbm [shape: f32[32,128], index: 0, kind: input, shape index: {}]   ;;  %s1292_s1 = inlined_call_operand.hbm [shape: f32[32,256], index: 1, kind: input, shape index: {}]   ;;  %s1293_s2 = inlined_call_operand.hbm [shape: f32[256,128], index: 2, kind: input, shape index: {}]   ;;  %s1294_s3 = inlined_call_operand.vmem [shape: f32[3,128], index: 3, kind: input, shape index: {}]   ;;  %s1295_s4 = inlined_call_operand.hbm [shape: f32[32,128], index: 4, kind: output, shape index: {0}]   ;;  %s1296_s5 = inlined_call_operand.hbm [shape: f32[32,128], index: 5, kind: output, shape index: {1}]  }
   0x1   :  { %1301 = sst [smem:[#allocation16_spill]] %s1291_s0 }
   0x2   :  { %11 = vsyncpa [#allocation3], 0 }
   0x3   :  { %13 = vsyncpa [#allocation3 + $0x1], 0 }
   0x4   :  { %14 = vsyncpa [#allocation6], 0 }
   0x5   :  { %16 = vsyncpa [#allocation6 + $0x1], 0 }
   0x6   :  { %17 = vsyncpa [#allocation4], 0 }
   0x7   :  { %19 = vsyncpa [#allocation4 + $0x1], 0 }
   0x8   :  { %20 = vsyncpa [#allocation10], 0 }
   0x9   :  { %22 = vsyncpa [#allocation10 + $0x1], 0  ;;  %s1018_s18 = smov 0   ;;  %s1020_s19 = smov 0  }
   0xa   :  { %s1022_s20 = smov 0   ;;  %s1024_s21 = smov 0  }
   0xb LB: > { %s1039_s22 = sadd.s32 4294967295, %s979_s21   ;;  %s618_s23 = sadd.s32 4294967294, %s979_s21   ;;  %s979_s21 = sphi %s1024_s21, %s1319_s21   ;;  %s975_s20 = sphi %s1022_s20, %s1318_s20   ;;  %s971_s19 = sphi %s1020_s19, %s1317_s19   ;;  %s967_s18 = sphi %s1018_s18, %s1316_s18  }
   0xc   : > { %p48_p0 = scmp.ne.s32.totalorder %s971_s19, %s967_s18  ;;  %p1297_p1 = scmp.eq.s32.totalorder %s1039_s22, 0 }
   0xd   : > { %p146_p3 = scmp.eq.s32.totalorder %s618_s23, 3  ;;  %p619_p5 = scmp.ge.s32.totalorder %s979_s21, 1 }
   0xe   : > { %p1048_p4 = por %p1297_p1, %p48_p0  ;;  %p179_p7 = scmp.lt.s32.totalorder %s979_s21, 5 }
   0xf   : > { %p1053_p6 = por %p146_p3, %p48_p0  ;;  %s981_s27 = smov [#allocation7]  }
  0x10   : > { %s1302_s24 = scalar_select %p1048_p4, 1, 0 }
  0x11   : > { %s1303_s25 = scalar_select %p1053_p6, 1, 0 }
  0x12   : > { %p1058_p8 = pnand %p619_p5, %p179_p7  ;;  %s191_s28 = sshll.u32 %s981_s27, 4  ;;  %s192_s28 = int_to_ptr.vmem [resolvable:$true] %s191_s28 }
  0x13   : > { %s1071_s30 = sadd.s32 1, %s979_s21   ;;  %s35_s6 = sadd.s32 1, %s975_s20 }
  0x14   : > { %s1304_s26 = scalar_select %p1058_p8, 1, 0 }
  0x15   : > { %p722_p9 = pneg %p1058_p8  ;;  %s32_s7 = ssub.s32 %s979_s21, %s1071_s30 }
  0x16   : > { %s785_s10 = scalar_lea.hbm %s1293_s2, 4096 }
  0x17   : > { %p1066_p10 = pnand %p722_p9, %p1297_p1  ;;  %p786_p11 = scmp.ne.s32.totalorder %s1293_s2, %s785_s10 }
  0x18   : > { %p792_p3 = scmp.lt.u32.totalorder %s785_s10, %s1293_s2 }
  0x19   : > { %p787_p12 = pneg %p1066_p10 }
  0x1b   : > { %p788_p13 = pnand %p787_p12, %p786_p11 }
  0x1d   : > { %p789_p0 = pneg %p788_p13 }
  0x1f   : > { %p794_p5 = pnand %p792_p3, %p789_p0 }
  0x21   : > { %797 = shalt.err (!%p794_p5)
}
  0x22   : > { %s798_s15 = scalar_lea.vmem %s192_s28, 4096  ;;  %p806_p2 = scmp.lt.s32.totalorder %s192_s28, %s192_s28 }
  0x23   : > { %p799_p7 = scmp.ne.s32.totalorder %s192_s28, %s798_s15  ;;  %p807_p6 = scmp.lt.s32.totalorder %s798_s15, %s798_s15 }
  0x25   : > { %p801_p9 = pnand %p799_p7, %p787_p12  ;;  %p808_p4 = por %p807_p6, %p806_p2 }
  0x27   : > { %p802_p1 = pneg %p801_p9 }
  0x29   : > { %p809_p8 = pnand %p808_p4, %p802_p1 }
  0x2b   : > { %812 = shalt.err (!%p809_p8)
}
  0x2c   : > { %s982_s16 = smov 128   ;;  %s983_s17 = smov 8  }
  0x2d   : > { %725 = dma.hbm_to_vmem [thread:$0]  (!%p1066_p10), %s1293_s2, 4096, %s192_s28, [#allocation6], %s982_s16, %s982_s16, %s983_s17  }
  0x2e   : > { %p33_p2 = scmp.eq.s32.totalorder %s32_s7, 0  ;;  %p42_p1 = scmp.ne.s32.totalorder %s975_s20, %s971_s19 }
  0x2f   : > { %p43_p4 = scmp.eq.s32.totalorder %s979_s21, 0  ;;  %p741_p6 = scmp.lt.s32.totalorder %s979_s21, 4 }
  0x30   : > { %s1097_s8 = scalar_select %p33_p2, %s975_s20, %s35_s6  }
  0x31   : > { %p44_p8 = por %p43_p4, %p42_p1  ;;  %p1306_p11 = scmp.eq.s32.totalorder %s1039_s22, 3 }
  0x32   : > { %s1106_s10 = sand.u32 1, %s975_s20   ;;  %s623_s29 = sshll.u32 %s979_s21, 7 }
  0x33   : > { %p1101_p12 = por %p1306_p11, %p42_p1  ;;  %s622_s11 = sshll.u32 %s1106_s10, 3 }
  0x34   : > { %s1308_s0 = sld [smem:[#allocation16_spill]]  ;;  %s212_s6 = scalar_lea.vmem [#allocation2], %s622_s11 }
  0x35   : > { %s1307_s9 = scalar_select %p1101_p12, 1, 0 }
  0x36   : > { %s219_s13 = sshll.u32 %s212_s6, 4  ;;  %p1115_p10 = pnand %p741_p6, %p44_p8  ;;  %s1119_s13 = int_to_ptr.vmem [resolvable:$true] %s219_s13 }
  0x37   : > { %s226_s15 = sand.u32 1, %s979_s21   ;;  %s209_s16 = scalar_lea.sflag [#allocation3], %s1106_s10 }
  0x38   : > { %p815_p0 = pneg %p1115_p10 }
  0x3a   : > { %s1113_s7 = scalar_lea.hbm %s1308_s0, %s623_s29  ;;  %s818_s29 = scalar_lea.hbm %s1308_s0, 512 }
  0x3b   : > { %s813_s17 = scalar_lea.hbm %s1113_s7, 128  ;;  %p819_p7 = scmp.lt.u32.totalorder %s1113_s7, %s1308_s0 }
  0x3c   : > { %p814_p13 = scmp.ne.s32.totalorder %s1113_s7, %s813_s17  ;;  %p820_p9 = scmp.lt.u32.totalorder %s818_s29, %s813_s17 }
  0x3d   : > { %p822_p1 = scmp.lt.u32.totalorder %s813_s17, %s1113_s7 }
  0x3e   : > { %p816_p3 = pnand %p815_p0, %p814_p13  ;;  %p821_p2 = por %p820_p9, %p819_p7 }
  0x40   : > { %p817_p5 = pneg %p816_p3  ;;  %p823_p4 = por %p822_p1, %p821_p2 }
  0x42   : > { %p824_p6 = pnand %p823_p4, %p817_p5 }
  0x44   : > { %827 = shalt.err (!%p824_p6)
}
  0x45   : > { %s828_s12 = scalar_lea.vmem %s1119_s13, 128  ;;  %s984_s6 = smov [#allocation2]  }
  0x46   : > { %p829_p8 = scmp.ne.s32.totalorder %s1119_s13, %s828_s12  ;;  %s833_s23 = sshll.u32 %s984_s6, 4  ;;  %s834_s23 = int_to_ptr.vmem [resolvable:$false] %s833_s23 }
  0x47   : > { %s835_s27 = scalar_lea.vmem %s834_s23, 256  ;;  %p836_p3 = scmp.lt.s32.totalorder %s1119_s13, %s834_s23 }
  0x48   : > { %p831_p11 = pnand %p829_p8, %p815_p0  ;;  %p837_p7 = scmp.lt.s32.totalorder %s835_s27, %s828_s12 }
  0x4a   : > { %p832_p13 = pneg %p831_p11  ;;  %p838_p9 = por %p837_p7, %p836_p3 }
  0x4c   : > { %p839_p2 = pnand %p838_p9, %p832_p13 }
  0x4e   : > { %842 = shalt.err (!%p839_p2)
}
  0x4f   : > { %729 = dma.hbm_to_vmem [thread:$0]  (!%p1115_p10), %s1113_s7, 128, %s1119_s13, %s209_s16  }
  0x50   : > { %s624_s17 = sshll.u32 %s1106_s10, 4  ;;  %s642_s29 = sshll.u32 %s979_s21, 8 }
  0x51   : > { %s1153_s6 = scalar_lea.hbm %s1292_s1, %s642_s29  ;;  %s230_s12 = scalar_lea.vmem [#allocation5], %s624_s17 }
  0x52   : > { %s238_s23 = sshll.u32 %s230_s12, 4  ;;  %s227_s27 = scalar_lea.sflag [#allocation6], %s226_s15  ;;  %s239_s23 = int_to_ptr.vmem [resolvable:$true] %s238_s23 }
  0x53   : > { %s843_s0 = scalar_lea.hbm %s1153_s6, 256  ;;  %s848_s13 = scalar_lea.hbm %s1292_s1, 1024 }
  0x54   : > { %p844_p5 = scmp.ne.s32.totalorder %s1153_s6, %s843_s0  ;;  %p849_p6 = scmp.lt.u32.totalorder %s1153_s6, %s1292_s1 }
  0x55   : > { %p850_p8 = scmp.lt.u32.totalorder %s848_s13, %s843_s0  ;;  %p852_p13 = scmp.lt.u32.totalorder %s843_s0, %s1153_s6 }
  0x56   : > { %p846_p1 = pnand %p844_p5, %p815_p0 }
  0x57   : > { %p851_p11 = por %p850_p8, %p849_p6 }
  0x58   : > { %p847_p4 = pneg %p846_p1 }
  0x59   : > { %p853_p3 = por %p852_p13, %p851_p11 }
  0x5b   : > { %p854_p7 = pnand %p853_p3, %p847_p4 }
  0x5d   : > { %857 = shalt.err (!%p854_p7)
}
  0x5e   : > { %s858_s15 = scalar_lea.vmem %s239_s23, 256  ;;  %s985_s17 = smov [#allocation5]  }
  0x5f   : > { %p859_p9 = scmp.ne.s32.totalorder %s239_s23, %s858_s15  ;;  %s863_s11 = sshll.u32 %s985_s17, 4  ;;  %s864_s11 = int_to_ptr.vmem [resolvable:$false] %s863_s11 }
  0x60   : > { %s865_s28 = scalar_lea.vmem %s864_s11, 512  ;;  %p866_p1 = scmp.lt.s32.totalorder %s239_s23, %s864_s11 }
  0x61   : > { %p861_p2 = pnand %p859_p9, %p815_p0  ;;  %p867_p12 = scmp.lt.s32.totalorder %s865_s28, %s858_s15 }
  0x63   : > { %p862_p5 = pneg %p861_p2  ;;  %p868_p6 = por %p867_p12, %p866_p1 }
  0x65   : > { %p869_p8 = pnand %p868_p6, %p862_p5 }
  0x67   : > { %872 = shalt.err (!%p869_p8)
}
  0x68   : > { %732 = dma.hbm_to_vmem [thread:$0]  (!%p1115_p10), %s1153_s6, 256, %s239_s23, %s227_s27  }
  0x69   : > { %p1310_p4 = scmp.ne.s32.totalorder %s1304_s26, 0 }
  0x6a   : > { %s1179_s0 = sand.u32 (!%p1310_p4), 1, %s971_s19   ;;  %p1311_p12 = scmp.ne.s32.totalorder (!%p1310_p4), %s1302_s24, 0 }
  0x6b   : > { %247 = sbr.rel (%p1310_p4) target bundleno = 859 (0x35b), region = 36  ;;  %s1182_s12 = sshll.u32 (!%p1310_p4), %s1179_s0, 3 }
  0x6c   : > { %s250_s10 = scalar_lea.sflag (!%p1310_p4), [#allocation3], %s1179_s0  ;;  %s253_s7 = scalar_lea.vmem (!%p1310_p4), [#allocation2], %s1182_s12 }
  0x72   : > { %946 = dma.done.wait (%p1311_p12), %s250_s10, 128  }
  0x73   : > { %948 = vsyncadd (%p1311_p12), %s250_s10, 4294967168  ;;  %s258_s26 = sand.u32 1, %s1039_s22   ;;  %s629_s14 = sshll.u32 %s1179_s0, 4 }
  0x74   : > { %s259_s6 = scalar_lea.sflag [#allocation6], %s258_s26  ;;  %s1192_s23 = scalar_lea.vmem [#allocation5], %s629_s14 }
  0x75   : > { %950 = dma.done.wait (%p1311_p12), %s259_s6, 256  }
  0x76   : > { %952 = vsyncadd (%p1311_p12), %s259_s6, 4294967040  ;;  %p1312_p10 = scmp.eq.s32.totalorder %s1039_s22, 0 }
  0x78   : > { %954 = dma.done.wait (%p1312_p10), [#allocation6], 4096   ;;  %p1313_p0 = pmov %p1312_p10 }
  0x79   : > { %v329_v0 = vld [vmem:[#allocation7 + $0x80] sm:$0xff]  ;;  %v330_v1 = vld [vmem:[#allocation7 + $0x88] sm:$0xff]  ;;  %v331_v5 = vld [vmem:[#allocation7 + $0x90] sm:$0xff]  ;;  %s638_s17 = sshll.u32 %s1039_s22, 7  ;;  %s295_s11 = scalar_lea.vmem [#allocation8], %s1182_s12 }
  0x7a   : > { %956 = vsyncadd (%p1313_p0), [#allocation6], 4294963200  ;;  %v313_v2 = vld [vmem:[#allocation7] sm:$0xff]  ;;  %v678_v3 = vpack.c.bf16 %v330_v1, %v329_v0  ;;  %v314_v4 = vld [vmem:[#allocation7 + $0x8] sm:$0xff]  ;;  %s471_s28 = sshll.u32 %s295_s11, 4  ;;  %s1222_s26 = scalar_lea.hbm %s1295_s4, %s638_s17  ;;  %s472_s28 = int_to_ptr.vmem [resolvable:$true] %s471_s28 }
  0x7b   : > { %v332_v6 = vld [vmem:[#allocation7 + $0x98] sm:$0xff]  ;;  %v680_v7 = vpack.c.bf16 %v314_v4, %v313_v2  ;;  %v315_v9 = vld [vmem:[#allocation7 + $0x10] sm:$0xff]  ;;  %v333_v11 = vld [vmem:[#allocation7 + $0xa0] sm:$0xff]  ;;  %s453_s14 = scalar_lea.sflag [#allocation4], %s1179_s0  ;;  %s873_s6 = scalar_lea.vmem %s472_s28, 128 }
  0x7c   : > { %v682_v8 = vpack.c.bf16 %v332_v6, %v331_v5  ;;  %v316_v10 = vld [vmem:[#allocation7 + $0x18] sm:$0xff]  ;;  %679 = vmatprep.subr.bf16.mxu0 %v678_v3  ;;  %v334_v12 = vld [vmem:[#allocation7 + $0xa8] sm:$0xff]  ;;  %v317_v15 = vld [vmem:[#allocation7 + $0x20] sm:$0xff]  ;;  %p874_p11 = scmp.ne.s32.totalorder %s472_s28, %s873_s6  ;;  %p1314_p13 = scmp.ne.s32.totalorder %s1307_s9, 0 }
  0x7d   : > { %681 = vmatpush3.bf16.msra.mxu0 %v680_v7  ;;  %v684_v13 = vpack.c.bf16 %v316_v10, %v315_v9  ;;  %v686_v14 = vpack.c.bf16 %v334_v12, %v333_v11  ;;  %v318_v16 = vld [vmem:[#allocation7 + $0x28] sm:$0xff]  ;;  %v335_v17 = vld [vmem:[#allocation7 + $0xb0] sm:$0xff]  ;;  %v336_v18 = vld [vmem:[#allocation7 + $0xb8] sm:$0xff] }
  0x7e   : > { %683 = vmatprep.subr.bf16.mxu0 %v682_v8  ;;  %v688_v19 = vpack.c.bf16 %v318_v16, %v317_v15  ;;  %v690_v20 = vpack.c.bf16 %v336_v18, %v335_v17  ;;  %v319_v21 = vld [vmem:[#allocation7 + $0x30] sm:$0xff]  ;;  %v320_v22 = vld [vmem:[#allocation7 + $0x38] sm:$0xff]  ;;  %v337_v23 = vld [vmem:[#allocation7 + $0xc0] sm:$0xff]  ;;  %p875_p3 = pnand %p874_p11, %p1314_p13 }
  0x7f   : > { %v338_v24 = vld [vmem:[#allocation7 + $0xc8] sm:$0xff]  ;;  %v692_v26 = vpack.c.bf16 %v320_v22, %v319_v21  ;;  %v321_v28 = vld [vmem:[#allocation7 + $0x40] sm:$0xff]  ;;  %v339_v30 = vld [vmem:[#allocation7 + $0xd0] sm:$0xff] }
  0x80   : > { %v312_v25 = vld [vmem:[%s1192_s23 + $0x8] sm:$0xff]  ;;  %v694_v27 = vpack.c.bf16 %v338_v24, %v337_v23  ;;  %v323_v34 = vld [vmem:[#allocation7 + $0x50] sm:$0xff]  ;;  %v341_v36 = vld [vmem:[#allocation7 + $0xe0] sm:$0xff]  ;;  %p876_p7 = pneg %p875_p3 }
  0x81   : > { %685 = vmatpush3.bf16.msra.mxu0 %v684_v13  ;;  %416 = vmatprep.mubr.f32.mxu0 %v312_v25  ;;  %v322_v29 = vld [vmem:[#allocation7 + $0x48] sm:$0xff]  ;;  %v340_v31 = vld [vmem:[#allocation7 + $0xd8] sm:$0xff]  ;;  %v325_v40 = vld [vmem:[#allocation7 + $0x60] sm:$0xff] }
  0x82   : > { %687 = vmatprep.subr.bf16.mxu0 %v686_v14  ;;  %v696_v32 = vpack.c.bf16 %v322_v29, %v321_v28  ;;  %v698_v33 = vpack.c.bf16 %v340_v31, %v339_v30  ;;  %v324_v35 = vld [vmem:[#allocation7 + $0x58] sm:$0xff]  ;;  %v342_v37 = vld [vmem:[#allocation7 + $0xe8] sm:$0xff]  ;;  %v343_v42 = vld [vmem:[#allocation7 + $0xf0] sm:$0xff] }
  0x83   : > { %v700_v38 = vpack.c.bf16 %v324_v35, %v323_v34  ;;  %v702_v39 = vpack.c.bf16 %v342_v37, %v341_v36  ;;  %v326_v41 = vld [vmem:[#allocation7 + $0x68] sm:$0xff]  ;;  %v344_v43 = vld [vmem:[#allocation7 + $0xf8] sm:$0xff]  ;;  %v327_v46 = vld [vmem:[#allocation7 + $0x70] sm:$0xff] }
  0x84   : > { %v704_v44 = vpack.c.bf16 %v326_v41, %v325_v40  ;;  %v706_v45 = vpack.c.bf16 %v344_v43, %v343_v42  ;;  %v328_v47 = vld [vmem:[#allocation7 + $0x78] sm:$0xff]  ;;  %v311_v49 = vld [vmem:[%s1192_s23] sm:$0xff]  ;;  %s986_s23 = smov [#allocation8]  }
  0x85   : > { %689 = vmatpush3.bf16.msra.mxu0 %v688_v19  ;;  %v708_v48 = vpack.c.bf16 %v328_v47, %v327_v46  ;;  %v633_v52 = vld [vmem:[%s1294_s3] ss:$0 sm:$0xff]  ;;  %v634_v2 = vld [vmem:[%s1294_s3 + $0x1] ss:$0 sm:$0xff]  ;;  %v635_v4 = vld [vmem:[%s1294_s3 + $0x2] ss:$0 sm:$0xff] }
  0x86   : > { %691 = vmatprep.subr.bf16.mxu0 %v690_v20  ;;  %v303_v60 = vld [vmem:[%s253_s7] sm:$0xff]  ;;  %s877_s24 = sshll.u32 %s986_s23, 4  ;;  %s878_s24 = int_to_ptr.vmem [resolvable:$false] %s877_s24 }
  0x87   : > { %v304_v61 = vmul.f32 %v303_v60, %v303_v60  ;;  %s879_s27 = scalar_lea.vmem %s878_s24, 256  ;;  %p880_p9 = scmp.lt.s32.totalorder %s472_s28, %s878_s24 }
  0x88   : > { %p881_p2 = scmp.lt.s32.totalorder %s879_s27, %s873_s6 }
  0x89   : > { %693 = vmatpush3.bf16.msra.mxu0 %v692_v26  ;;  %305 = vadd.xlane.f32.xlu1 %v304_v61 }
  0x8a   : > { %695 = vmatprep.subr.bf16.mxu0 %v694_v27  ;;  %p882_p5 = por %p881_p2, %p880_p9 }
  0x8c   : > { %p883_p1 = pnand %p882_p5, %p876_p7 }
  0x8d   : > { %697 = vmatpush3.bf16.msra.mxu0 %v696_v32 }
  0x8e   : > { %699 = vmatprep.subr.bf16.mxu0 %v698_v33 }
  0x91   : > { %701 = vmatpush3.bf16.msra.mxu0 %v700_v38 }
  0x92   : > { %703 = vmatprep.subr.bf16.mxu0 %v702_v39 }
  0x95   : > { %705 = vmatpush3.bf16.msra.mxu0 %v704_v44 }
  0x96   : > { %707 = vmatprep.subr.bf16.mxu0 %v706_v45 }
  0x99   : > { %709 = vmatpush3.bf16.msra.mxu0 %v708_v48 }
  0x9c   : > { %417 = vmatmul.mubr.f32.vlgmr.msra.gmra.mrb[0].mxu0 %v311_v49 }
 0x116   : > { %v306_v7 = vpop.xlane.xlu1 %305 }
 0x117   : > { %v307_v9 = vmax.f32 %v306_v7, 1e-24 }
 0x16f   : > { %v675_v50 = vpop.f32.mrb[0].mxu0 }
 0x170   : > { %v676_v51 = vpop.f32.mrb[1].mxu0 }
 0x171   : > { %v677_v53 = vadd.f32 %v676_v51, %v675_v50 }
 0x173   : > { %v419_v54 = vadd.f32 %v677_v53, %v633_v52 }
 0x175   : > { %v422_v55 = vmax.f32 %v419_v54, 0.0 }
 0x177   : > { %423 = vadd.xlane.f32.xlu0 %v422_v55 }
 0x204   : > { %v424_v56 = vpop.xlane.xlu0 %423 }
 0x205   : > { %v426_v57 = vmul.f32 0.0078125, %v424_v56 }
 0x207   : > { %v427_v58 = vsub.f32 %v422_v55, %v426_v57 }
 0x209   : > { %v428_v59 = vmul.f32 %v427_v58, %v427_v58 }
 0x20b   : > { %429 = vadd.xlane.f32.xlu0 %v428_v59 }
 0x298   : > { %v430_v62 = vpop.xlane.xlu0 %429 }
 0x299   : > { %v431_v63 = vmul.f32 0.0078125, %v430_v62 }
 0x29b   : > { %v432_v0 = vadd.f32 1e-05, %v431_v63 }
 0x29d   : > { %779 = vrsqrt.f32 %v432_v0 }
 0x29e   : > { %781 = vrsqrt.f32 %v307_v9 }
 0x2a7   : > { %v780_v1 = vpop.eup %779 }
 0x2a8   : > { %v434_v3 = vmul.f32 %v780_v1, %v427_v58  ;;  %v782_v10 = vpop.eup %781 }
 0x2a9   : > { %v309_v11 = vmul.f32 %v782_v10, %v303_v60 }
 0x2aa   : > { %v439_v5 = vmul.f32 %v634_v2, %v434_v3 }
 0x2ab   : > { %310 = vst [vmem:[%s295_s11] sm:$0xff] %v309_v11 }
 0x2ac   : > { %v444_v6 = vadd.f32 %v635_v4, %v439_v5 }
 0x2ae   : > { %v445_v8 = vmul.f32 %v444_v6, %v444_v6 }
 0x2b0   : > { %446 = vadd.xlane.f32.xlu1 %v445_v8 }
 0x2b1   : > { %886 = shalt.err (!%p883_p1)
}
 0x2b2   : > { %s887_s13 = scalar_lea.hbm %s1222_s26, 128  ;;  %s891_s15 = scalar_lea.hbm %s1295_s4, 512 }
 0x2b3   : > { %p888_p6 = scmp.ne.s32.totalorder %s1222_s26, %s887_s13  ;;  %p892_p12 = scmp.lt.u32.totalorder %s1222_s26, %s1295_s4 }
 0x2b4   : > { %p893_p10 = scmp.lt.u32.totalorder %s891_s15, %s887_s13  ;;  %p895_p11 = scmp.lt.u32.totalorder %s887_s13, %s1222_s26 }
 0x2b5   : > { %p889_p8 = pnand %p888_p6, %p1314_p13 }
 0x2b6   : > { %p894_p0 = por %p893_p10, %p892_p12 }
 0x2b7   : > { %p890_p4 = pneg %p889_p8 }
 0x2b8   : > { %p896_p3 = por %p895_p11, %p894_p0 }
 0x2ba   : > { %p897_p7 = pnand %p896_p3, %p890_p4 }
 0x2bc   : > { %900 = shalt.err (!%p897_p7)
}
 0x2bd   : > { %718 = dma.vmem_to_hbm [thread:$0]  (%p1314_p13), %s472_s28, 128, %s1222_s26, %s453_s14  }
 0x2be   : > { %s302_s7 = scalar_lea.vmem [#allocation9], %s1182_s12  ;;  %s1248_s27 = scalar_lea.hbm %s1296_s5, %s638_s17 }
 0x2bf   : > { %s484_s6 = sshll.u32 %s302_s7, 4  ;;  %s458_s28 = scalar_lea.sflag [#allocation10], %s1179_s0  ;;  %s1250_s6 = int_to_ptr.vmem [resolvable:$true] %s484_s6 }
 0x2c0   : > { %s901_s26 = scalar_lea.vmem %s1250_s6, 128  ;;  %s987_s12 = smov [#allocation9]  }
 0x2c1   : > { %p902_p9 = scmp.ne.s32.totalorder %s1250_s6, %s901_s26  ;;  %s905_s14 = sshll.u32 %s987_s12, 4  ;;  %s906_s14 = int_to_ptr.vmem [resolvable:$false] %s905_s14 }
 0x2c2   : > { %s907_s22 = scalar_lea.vmem %s906_s14, 256  ;;  %p908_p1 = scmp.lt.s32.totalorder %s1250_s6, %s906_s14 }
 0x2c3   : > { %p903_p2 = pnand %p902_p9, %p1314_p13  ;;  %p909_p6 = scmp.lt.s32.totalorder %s907_s22, %s901_s26 }
 0x2c5   : > { %p904_p5 = pneg %p903_p2  ;;  %p910_p8 = por %p909_p6, %p908_p1 }
 0x2c7   : > { %p911_p4 = pnand %p910_p8, %p904_p5 }
 0x33d   : > { %v447_v12 = vpop.xlane.xlu1 %446 }
 0x33e   : > { %v448_v13 = vmax.f32 %v447_v12, 1e-24 }
 0x340   : > { %783 = vrsqrt.f32 %v448_v13 }
 0x34a   : > { %v784_v14 = vpop.eup %783 }
 0x34b   : > { %v450_v15 = vmul.f32 %v784_v14, %v444_v6 }
 0x34d   : > { %451 = vst [vmem:[%s302_s7] sm:$0xff] %v450_v15 }
 0x34e   : > { %914 = shalt.err (!%p911_p4)
}
 0x34f   : > { %s915_s0 = scalar_lea.hbm %s1248_s27, 128  ;;  %s919_s16 = scalar_lea.hbm %s1296_s5, 512 }
 0x350   : > { %p916_p12 = scmp.ne.s32.totalorder %s1248_s27, %s915_s0  ;;  %p920_p11 = scmp.lt.u32.totalorder %s1248_s27, %s1296_s5 }
 0x351   : > { %p921_p3 = scmp.lt.u32.totalorder %s919_s16, %s915_s0  ;;  %p923_p9 = scmp.lt.u32.totalorder %s915_s0, %s1248_s27 }
 0x352   : > { %p917_p10 = pnand %p916_p12, %p1314_p13 }
 0x353   : > { %p922_p7 = por %p921_p3, %p920_p11 }
 0x354   : > { %p918_p0 = pneg %p917_p10 }
 0x355   : > { %p924_p2 = por %p923_p9, %p922_p7 }
 0x357   : > { %p925_p5 = pnand %p924_p2, %p918_p0 }
 0x359   : > { %928 = shalt.err (!%p925_p5)
}
 0x35a   : > { %719 = dma.vmem_to_hbm [thread:$0]  (%p1314_p13), %s1250_s6, 128, %s1248_s27, %s458_s28  }
 0x35b PF: > { %p743_p1 = scmp.ge.s32.totalorder %s979_s21, 2  ;;  %s496_s11 = sand.u32 1, %s967_s18  }
 0x35c   : > { %p1315_p6 = scmp.ne.s32.totalorder %s1303_s25, 0  ;;  %s497_s10 = scalar_lea.sflag [#allocation4], %s496_s11 }
 0x35e   : > { %p734_p8 = pnand %p743_p1, %p1315_p6 }
 0x360   : > { %958 = dma.done.wait (!%p734_p8), %s497_s10, 128  }
 0x361   : > { %960 = vsyncadd (!%p734_p8), %s497_s10, 4294967168  ;;  %s506_s7 = scalar_lea.sflag [#allocation10], %s496_s11 }
 0x362   : > { %962 = dma.done.wait (!%p734_p8), %s506_s7, 128  }
 0x363   : > { %964 = vsyncadd (!%p734_p8), %s506_s7, 4294967168  ;;  %p25_p13 = scmp.ge.s32.totalorder %s1071_s30, 6   ;;  %s1316_s18 = smov %s971_s19 }
 0x364   : > { %s1317_s19 = smov %s975_s20  ;;  %s1318_s20 = smov %s1097_s8 }
 0x365   : > { %s1319_s21 = smov %s1071_s30  ;;  %27 = sbr.rel (!%p25_p13) target bundleno = 11 (0xb), region = 115 }
 0x36c   :  { %511 = vsyncpa [#allocation3], 1 }
 0x36d   :  { %513 = vsyncpa [#allocation3 + $0x1], 1 }
 0x36e   :  { %514 = vsyncpa [#allocation6], 1 }
 0x36f   :  { %516 = vsyncpa [#allocation6 + $0x1], 1 }
 0x370   :  { %517 = vsyncpa [#allocation4], 1 }
 0x371   :  { %519 = vsyncpa [#allocation4 + $0x1], 1 }
 0x372   :  { %520 = vsyncpa [#allocation10], 1 }
 0x373   :  { %522 = vsyncpa [#allocation10 + $0x1], 1 }

// kernel: tpu_custom_call.1
= control target key start
LH: loop header
LB: loop body
LE: loop exit
PB: predicated region body
PF: predicated region fallthrough
CT: control target
= control target key end

     0   :  { %s1291_s0 = inlined_call_operand.hbm [shape: f32[32,128], index: 0, kind: input, shape index: {}]   ;;  %s1292_s1 = inlined_call_operand.hbm [shape: f32[32,256], index: 1, kind: input, shape index: {}]   ;;  %s1293_s2 = inlined_call_operand.hbm [shape: f32[256,128], index: 2, kind: input, shape index: {}]   ;;  %s1294_s3 = inlined_call_operand.vmem [shape: f32[3,128], index: 3, kind: input, shape index: {}]   ;;  %s1295_s4 = inlined_call_operand.hbm [shape: f32[32,128], index: 4, kind: output, shape index: {0}]   ;;  %s1296_s5 = inlined_call_operand.hbm [shape: f32[32,128], index: 5, kind: output, shape index: {1}]  }
   0x1   :  { %1301 = sst [smem:[#allocation16_spill]] %s1291_s0 }
   0x2   :  { %11 = vsyncpa [#allocation3], 0 }
   0x3   :  { %13 = vsyncpa [#allocation3 + $0x1], 0 }
   0x4   :  { %14 = vsyncpa [#allocation6], 0 }
   0x5   :  { %16 = vsyncpa [#allocation6 + $0x1], 0 }
   0x6   :  { %17 = vsyncpa [#allocation4], 0 }
   0x7   :  { %19 = vsyncpa [#allocation4 + $0x1], 0 }
   0x8   :  { %20 = vsyncpa [#allocation10], 0 }
   0x9   :  { %22 = vsyncpa [#allocation10 + $0x1], 0  ;;  %s1018_s18 = smov 0   ;;  %s1020_s19 = smov 0  }
   0xa   :  { %s1022_s20 = smov 0   ;;  %s1024_s21 = smov 0  }
   0xb LB: > { %s1039_s22 = sadd.s32 4294967295, %s979_s21   ;;  %s618_s23 = sadd.s32 4294967294, %s979_s21   ;;  %s979_s21 = sphi %s1024_s21, %s1319_s21   ;;  %s975_s20 = sphi %s1022_s20, %s1318_s20   ;;  %s971_s19 = sphi %s1020_s19, %s1317_s19   ;;  %s967_s18 = sphi %s1018_s18, %s1316_s18  }
   0xc   : > { %p48_p0 = scmp.ne.s32.totalorder %s971_s19, %s967_s18  ;;  %p1297_p1 = scmp.eq.s32.totalorder %s1039_s22, 0 }
   0xd   : > { %p146_p3 = scmp.eq.s32.totalorder %s618_s23, 3  ;;  %p619_p5 = scmp.ge.s32.totalorder %s979_s21, 1 }
   0xe   : > { %p1048_p4 = por %p1297_p1, %p48_p0  ;;  %p179_p7 = scmp.lt.s32.totalorder %s979_s21, 5 }
   0xf   : > { %p1053_p6 = por %p146_p3, %p48_p0  ;;  %s981_s27 = smov [#allocation7]  }
  0x10   : > { %s1302_s24 = scalar_select %p1048_p4, 1, 0 }
  0x11   : > { %s1303_s25 = scalar_select %p1053_p6, 1, 0 }
  0x12   : > { %p1058_p8 = pnand %p619_p5, %p179_p7  ;;  %s191_s28 = sshll.u32 %s981_s27, 4  ;;  %s192_s28 = int_to_ptr.vmem [resolvable:$true] %s191_s28 }
  0x13   : > { %s1071_s30 = sadd.s32 1, %s979_s21   ;;  %s35_s6 = sadd.s32 1, %s975_s20 }
  0x14   : > { %s1304_s26 = scalar_select %p1058_p8, 1, 0 }
  0x15   : > { %p722_p9 = pneg %p1058_p8  ;;  %s32_s7 = ssub.s32 %s979_s21, %s1071_s30 }
  0x16   : > { %s785_s10 = scalar_lea.hbm %s1293_s2, 4096 }
  0x17   : > { %p1066_p10 = pnand %p722_p9, %p1297_p1  ;;  %p786_p11 = scmp.ne.s32.totalorder %s1293_s2, %s785_s10 }
  0x18   : > { %p792_p3 = scmp.lt.u32.totalorder %s785_s10, %s1293_s2 }
  0x19   : > { %p787_p12 = pneg %p1066_p10 }
  0x1b   : > { %p788_p13 = pnand %p787_p12, %p786_p11 }
  0x1d   : > { %p789_p0 = pneg %p788_p13 }
  0x1f   : > { %p794_p5 = pnand %p792_p3, %p789_p0 }
  0x21   : > { %797 = shalt.err (!%p794_p5)
}
  0x22   : > { %s798_s15 = scalar_lea.vmem %s192_s28, 4096  ;;  %p806_p2 = scmp.lt.s32.totalorder %s192_s28, %s192_s28 }
  0x23   : > { %p799_p7 = scmp.ne.s32.totalorder %s192_s28, %s798_s15  ;;  %p807_p6 = scmp.lt.s32.totalorder %s798_s15, %s798_s15 }
  0x25   : > { %p801_p9 = pnand %p799_p7, %p787_p12  ;;  %p808_p4 = por %p807_p6, %p806_p2 }
  0x27   : > { %p802_p1 = pneg %p801_p9 }
  0x29   : > { %p809_p8 = pnand %p808_p4, %p802_p1 }
  0x2b   : > { %812 = shalt.err (!%p809_p8)
}
  0x2c   : > { %s982_s16 = smov 128   ;;  %s983_s17 = smov 8  }
  0x2d   : > { %725 = dma.hbm_to_vmem [thread:$0]  (!%p1066_p10), %s1293_s2, 4096, %s192_s28, [#allocation6], %s982_s16, %s982_s16, %s983_s17  }
  0x2e   : > { %p33_p2 = scmp.eq.s32.totalorder %s32_s7, 0  ;;  %p42_p1 = scmp.ne.s32.totalorder %s975_s20, %s971_s19 }
  0x2f   : > { %p43_p4 = scmp.eq.s32.totalorder %s979_s21, 0  ;;  %p741_p6 = scmp.lt.s32.totalorder %s979_s21, 4 }
  0x30   : > { %s1097_s8 = scalar_select %p33_p2, %s975_s20, %s35_s6  }
  0x31   : > { %p44_p8 = por %p43_p4, %p42_p1  ;;  %p1306_p11 = scmp.eq.s32.totalorder %s1039_s22, 3 }
  0x32   : > { %s1106_s10 = sand.u32 1, %s975_s20   ;;  %s623_s29 = sshll.u32 %s979_s21, 7 }
  0x33   : > { %p1101_p12 = por %p1306_p11, %p42_p1  ;;  %s622_s11 = sshll.u32 %s1106_s10, 3 }
  0x34   : > { %s1308_s0 = sld [smem:[#allocation16_spill]]  ;;  %s212_s6 = scalar_lea.vmem [#allocation2], %s622_s11 }
  0x35   : > { %s1307_s9 = scalar_select %p1101_p12, 1, 0 }
  0x36   : > { %s219_s13 = sshll.u32 %s212_s6, 4  ;;  %p1115_p10 = pnand %p741_p6, %p44_p8  ;;  %s1119_s13 = int_to_ptr.vmem [resolvable:$true] %s219_s13 }
  0x37   : > { %s226_s15 = sand.u32 1, %s979_s21   ;;  %s209_s16 = scalar_lea.sflag [#allocation3], %s1106_s10 }
  0x38   : > { %p815_p0 = pneg %p1115_p10 }
  0x3a   : > { %s1113_s7 = scalar_lea.hbm %s1308_s0, %s623_s29  ;;  %s818_s29 = scalar_lea.hbm %s1308_s0, 512 }
  0x3b   : > { %s813_s17 = scalar_lea.hbm %s1113_s7, 128  ;;  %p819_p7 = scmp.lt.u32.totalorder %s1113_s7, %s1308_s0 }
  0x3c   : > { %p814_p13 = scmp.ne.s32.totalorder %s1113_s7, %s813_s17  ;;  %p820_p9 = scmp.lt.u32.totalorder %s818_s29, %s813_s17 }
  0x3d   : > { %p822_p1 = scmp.lt.u32.totalorder %s813_s17, %s1113_s7 }
  0x3e   : > { %p816_p3 = pnand %p815_p0, %p814_p13  ;;  %p821_p2 = por %p820_p9, %p819_p7 }
  0x40   : > { %p817_p5 = pneg %p816_p3  ;;  %p823_p4 = por %p822_p1, %p821_p2 }
  0x42   : > { %p824_p6 = pnand %p823_p4, %p817_p5 }
  0x44   : > { %827 = shalt.err (!%p824_p6)
}
  0x45   : > { %s828_s12 = scalar_lea.vmem %s1119_s13, 128  ;;  %s984_s6 = smov [#allocation2]  }
  0x46   : > { %p829_p8 = scmp.ne.s32.totalorder %s1119_s13, %s828_s12  ;;  %s833_s23 = sshll.u32 %s984_s6, 4  ;;  %s834_s23 = int_to_ptr.vmem [resolvable:$false] %s833_s23 }
  0x47   : > { %s835_s27 = scalar_lea.vmem %s834_s23, 256  ;;  %p836_p3 = scmp.lt.s32.totalorder %s1119_s13, %s834_s23 }
  0x48   : > { %p831_p11 = pnand %p829_p8, %p815_p0  ;;  %p837_p7 = scmp.lt.s32.totalorder %s835_s27, %s828_s12 }
  0x4a   : > { %p832_p13 = pneg %p831_p11  ;;  %p838_p9 = por %p837_p7, %p836_p3 }
  0x4c   : > { %p839_p2 = pnand %p838_p9, %p832_p13 }
  0x4e   : > { %842 = shalt.err (!%p839_p2)
}
  0x4f   : > { %729 = dma.hbm_to_vmem [thread:$0]  (!%p1115_p10), %s1113_s7, 128, %s1119_s13, %s209_s16  }
  0x50   : > { %s624_s17 = sshll.u32 %s1106_s10, 4  ;;  %s642_s29 = sshll.u32 %s979_s21, 8 }
  0x51   : > { %s1153_s6 = scalar_lea.hbm %s1292_s1, %s642_s29  ;;  %s230_s12 = scalar_lea.vmem [#allocation5], %s624_s17 }
  0x52   : > { %s238_s23 = sshll.u32 %s230_s12, 4  ;;  %s227_s27 = scalar_lea.sflag [#allocation6], %s226_s15  ;;  %s239_s23 = int_to_ptr.vmem [resolvable:$true] %s238_s23 }
  0x53   : > { %s843_s0 = scalar_lea.hbm %s1153_s6, 256  ;;  %s848_s13 = scalar_lea.hbm %s1292_s1, 1024 }
  0x54   : > { %p844_p5 = scmp.ne.s32.totalorder %s1153_s6, %s843_s0  ;;  %p849_p6 = scmp.lt.u32.totalorder %s1153_s6, %s1292_s1 }
  0x55   : > { %p850_p8 = scmp.lt.u32.totalorder %s848_s13, %s843_s0  ;;  %p852_p13 = scmp.lt.u32.totalorder %s843_s0, %s1153_s6 }
  0x56   : > { %p846_p1 = pnand %p844_p5, %p815_p0 }
  0x57   : > { %p851_p11 = por %p850_p8, %p849_p6 }
  0x58   : > { %p847_p4 = pneg %p846_p1 }
  0x59   : > { %p853_p3 = por %p852_p13, %p851_p11 }
  0x5b   : > { %p854_p7 = pnand %p853_p3, %p847_p4 }
  0x5d   : > { %857 = shalt.err (!%p854_p7)
}
  0x5e   : > { %s858_s15 = scalar_lea.vmem %s239_s23, 256  ;;  %s985_s17 = smov [#allocation5]  }
  0x5f   : > { %p859_p9 = scmp.ne.s32.totalorder %s239_s23, %s858_s15  ;;  %s863_s11 = sshll.u32 %s985_s17, 4  ;;  %s864_s11 = int_to_ptr.vmem [resolvable:$false] %s863_s11 }
  0x60   : > { %s865_s28 = scalar_lea.vmem %s864_s11, 512  ;;  %p866_p1 = scmp.lt.s32.totalorder %s239_s23, %s864_s11 }
  0x61   : > { %p861_p2 = pnand %p859_p9, %p815_p0  ;;  %p867_p12 = scmp.lt.s32.totalorder %s865_s28, %s858_s15 }
  0x63   : > { %p862_p5 = pneg %p861_p2  ;;  %p868_p6 = por %p867_p12, %p866_p1 }
  0x65   : > { %p869_p8 = pnand %p868_p6, %p862_p5 }
  0x67   : > { %872 = shalt.err (!%p869_p8)
}
  0x68   : > { %732 = dma.hbm_to_vmem [thread:$0]  (!%p1115_p10), %s1153_s6, 256, %s239_s23, %s227_s27  }
  0x69   : > { %p1310_p4 = scmp.ne.s32.totalorder %s1304_s26, 0 }
  0x6a   : > { %s1179_s0 = sand.u32 (!%p1310_p4), 1, %s971_s19   ;;  %p1311_p12 = scmp.ne.s32.totalorder (!%p1310_p4), %s1302_s24, 0 }
  0x6b   : > { %247 = sbr.rel (%p1310_p4) target bundleno = 859 (0x35b), region = 36  ;;  %s1182_s12 = sshll.u32 (!%p1310_p4), %s1179_s0, 3 }
  0x6c   : > { %s250_s10 = scalar_lea.sflag (!%p1310_p4), [#allocation3], %s1179_s0  ;;  %s253_s7 = scalar_lea.vmem (!%p1310_p4), [#allocation2], %s1182_s12 }
  0x72   : > { %946 = dma.done.wait (%p1311_p12), %s250_s10, 128  }
  0x73   : > { %948 = vsyncadd (%p1311_p12), %s250_s10, 4294967168  ;;  %s258_s26 = sand.u32 1, %s1039_s22   ;;  %s629_s14 = sshll.u32 %s1179_s0, 4 }
  0x74   : > { %s259_s6 = scalar_lea.sflag [#allocation6], %s258_s26  ;;  %s1192_s23 = scalar_lea.vmem [#allocation5], %s629_s14 }
  0x75   : > { %950 = dma.done.wait (%p1311_p12), %s259_s6, 256  }
  0x76   : > { %952 = vsyncadd (%p1311_p12), %s259_s6, 4294967040  ;;  %p1312_p10 = scmp.eq.s32.totalorder %s1039_s22, 0 }
  0x78   : > { %954 = dma.done.wait (%p1312_p10), [#allocation6], 4096   ;;  %p1313_p0 = pmov %p1312_p10 }
  0x79   : > { %v329_v0 = vld [vmem:[#allocation7 + $0x80] sm:$0xff]  ;;  %v330_v1 = vld [vmem:[#allocation7 + $0x88] sm:$0xff]  ;;  %v331_v5 = vld [vmem:[#allocation7 + $0x90] sm:$0xff]  ;;  %s638_s17 = sshll.u32 %s1039_s22, 7  ;;  %s295_s11 = scalar_lea.vmem [#allocation8], %s1182_s12 }
  0x7a   : > { %956 = vsyncadd (%p1313_p0), [#allocation6], 4294963200  ;;  %v313_v2 = vld [vmem:[#allocation7] sm:$0xff]  ;;  %v678_v3 = vpack.c.bf16 %v330_v1, %v329_v0  ;;  %v314_v4 = vld [vmem:[#allocation7 + $0x8] sm:$0xff]  ;;  %s471_s28 = sshll.u32 %s295_s11, 4  ;;  %s1222_s26 = scalar_lea.hbm %s1295_s4, %s638_s17  ;;  %s472_s28 = int_to_ptr.vmem [resolvable:$true] %s471_s28 }
  0x7b   : > { %v332_v6 = vld [vmem:[#allocation7 + $0x98] sm:$0xff]  ;;  %v680_v7 = vpack.c.bf16 %v314_v4, %v313_v2  ;;  %v315_v9 = vld [vmem:[#allocation7 + $0x10] sm:$0xff]  ;;  %v333_v11 = vld [vmem:[#allocation7 + $0xa0] sm:$0xff]  ;;  %s453_s14 = scalar_lea.sflag [#allocation4], %s1179_s0  ;;  %s873_s6 = scalar_lea.vmem %s472_s28, 128 }
  0x7c   : > { %v682_v8 = vpack.c.bf16 %v332_v6, %v331_v5  ;;  %v316_v10 = vld [vmem:[#allocation7 + $0x18] sm:$0xff]  ;;  %679 = vmatprep.subr.bf16.mxu0 %v678_v3  ;;  %v334_v12 = vld [vmem:[#allocation7 + $0xa8] sm:$0xff]  ;;  %v317_v15 = vld [vmem:[#allocation7 + $0x20] sm:$0xff]  ;;  %p874_p11 = scmp.ne.s32.totalorder %s472_s28, %s873_s6  ;;  %p1314_p13 = scmp.ne.s32.totalorder %s1307_s9, 0 }
  0x7d   : > { %681 = vmatpush3.bf16.msra.mxu0 %v680_v7  ;;  %v684_v13 = vpack.c.bf16 %v316_v10, %v315_v9  ;;  %v686_v14 = vpack.c.bf16 %v334_v12, %v333_v11  ;;  %v318_v16 = vld [vmem:[#allocation7 + $0x28] sm:$0xff]  ;;  %v335_v17 = vld [vmem:[#allocation7 + $0xb0] sm:$0xff]  ;;  %v336_v18 = vld [vmem:[#allocation7 + $0xb8] sm:$0xff] }
  0x7e   : > { %683 = vmatprep.subr.bf16.mxu0 %v682_v8  ;;  %v688_v19 = vpack.c.bf16 %v318_v16, %v317_v15  ;;  %v690_v20 = vpack.c.bf16 %v336_v18, %v335_v17  ;;  %v319_v21 = vld [vmem:[#allocation7 + $0x30] sm:$0xff]  ;;  %v320_v22 = vld [vmem:[#allocation7 + $0x38] sm:$0xff]  ;;  %v337_v23 = vld [vmem:[#allocation7 + $0xc0] sm:$0xff]  ;;  %p875_p3 = pnand %p874_p11, %p1314_p13 }
  0x7f   : > { %v338_v24 = vld [vmem:[#allocation7 + $0xc8] sm:$0xff]  ;;  %v692_v26 = vpack.c.bf16 %v320_v22, %v319_v21  ;;  %v321_v28 = vld [vmem:[#allocation7 + $0x40] sm:$0xff]  ;;  %v339_v30 = vld [vmem:[#allocation7 + $0xd0] sm:$0xff] }
  0x80   : > { %v312_v25 = vld [vmem:[%s1192_s23 + $0x8] sm:$0xff]  ;;  %v694_v27 = vpack.c.bf16 %v338_v24, %v337_v23  ;;  %v323_v34 = vld [vmem:[#allocation7 + $0x50] sm:$0xff]  ;;  %v341_v36 = vld [vmem:[#allocation7 + $0xe0] sm:$0xff]  ;;  %p876_p7 = pneg %p875_p3 }
  0x81   : > { %685 = vmatpush3.bf16.msra.mxu0 %v684_v13  ;;  %416 = vmatprep.mubr.f32.mxu0 %v312_v25  ;;  %v322_v29 = vld [vmem:[#allocation7 + $0x48] sm:$0xff]  ;;  %v340_v31 = vld [vmem:[#allocation7 + $0xd8] sm:$0xff]  ;;  %v325_v40 = vld [vmem:[#allocation7 + $0x60] sm:$0xff] }
  0x82   : > { %687 = vmatprep.subr.bf16.mxu0 %v686_v14  ;;  %v696_v32 = vpack.c.bf16 %v322_v29, %v321_v28  ;;  %v698_v33 = vpack.c.bf16 %v340_v31, %v339_v30  ;;  %v324_v35 = vld [vmem:[#allocation7 + $0x58] sm:$0xff]  ;;  %v342_v37 = vld [vmem:[#allocation7 + $0xe8] sm:$0xff]  ;;  %v343_v42 = vld [vmem:[#allocation7 + $0xf0] sm:$0xff] }
  0x83   : > { %v700_v38 = vpack.c.bf16 %v324_v35, %v323_v34  ;;  %v702_v39 = vpack.c.bf16 %v342_v37, %v341_v36  ;;  %v326_v41 = vld [vmem:[#allocation7 + $0x68] sm:$0xff]  ;;  %v344_v43 = vld [vmem:[#allocation7 + $0xf8] sm:$0xff]  ;;  %v327_v46 = vld [vmem:[#allocation7 + $0x70] sm:$0xff] }
  0x84   : > { %v704_v44 = vpack.c.bf16 %v326_v41, %v325_v40  ;;  %v706_v45 = vpack.c.bf16 %v344_v43, %v343_v42  ;;  %v328_v47 = vld [vmem:[#allocation7 + $0x78] sm:$0xff]  ;;  %v311_v49 = vld [vmem:[%s1192_s23] sm:$0xff]  ;;  %s986_s23 = smov [#allocation8]  }
  0x85   : > { %689 = vmatpush3.bf16.msra.mxu0 %v688_v19  ;;  %v708_v48 = vpack.c.bf16 %v328_v47, %v327_v46  ;;  %v633_v52 = vld [vmem:[%s1294_s3] ss:$0 sm:$0xff]  ;;  %v634_v2 = vld [vmem:[%s1294_s3 + $0x1] ss:$0 sm:$0xff]  ;;  %v635_v4 = vld [vmem:[%s1294_s3 + $0x2] ss:$0 sm:$0xff] }
  0x86   : > { %691 = vmatprep.subr.bf16.mxu0 %v690_v20  ;;  %v303_v60 = vld [vmem:[%s253_s7] sm:$0xff]  ;;  %s877_s24 = sshll.u32 %s986_s23, 4  ;;  %s878_s24 = int_to_ptr.vmem [resolvable:$false] %s877_s24 }
  0x87   : > { %v304_v61 = vmul.f32 %v303_v60, %v303_v60  ;;  %s879_s27 = scalar_lea.vmem %s878_s24, 256  ;;  %p880_p9 = scmp.lt.s32.totalorder %s472_s28, %s878_s24 }
  0x88   : > { %p881_p2 = scmp.lt.s32.totalorder %s879_s27, %s873_s6 }
  0x89   : > { %693 = vmatpush3.bf16.msra.mxu0 %v692_v26  ;;  %305 = vadd.xlane.f32.xlu1 %v304_v61 }
  0x8a   : > { %695 = vmatprep.subr.bf16.mxu0 %v694_v27  ;;  %p882_p5 = por %p881_p2, %p880_p9 }
  0x8c   : > { %p883_p1 = pnand %p882_p5, %p876_p7 }
  0x8d   : > { %697 = vmatpush3.bf16.msra.mxu0 %v696_v32 }
  0x8e   : > { %699 = vmatprep.subr.bf16.mxu0 %v698_v33 }
  0x91   : > { %701 = vmatpush3.bf16.msra.mxu0 %v700_v38 }
  0x92   : > { %703 = vmatprep.subr.bf16.mxu0 %v702_v39 }
  0x95   : > { %705 = vmatpush3.bf16.msra.mxu0 %v704_v44 }
  0x96   : > { %707 = vmatprep.subr.bf16.mxu0 %v706_v45 }
  0x99   : > { %709 = vmatpush3.bf16.msra.mxu0 %v708_v48 }
  0x9c   : > { %417 = vmatmul.mubr.f32.vlgmr.msra.gmra.mrb[0].mxu0 %v311_v49 }
 0x116   : > { %v306_v7 = vpop.xlane.xlu1 %305 }
 0x117   : > { %v307_v9 = vmax.f32 %v306_v7, 1e-24 }
 0x16f   : > { %v675_v50 = vpop.f32.mrb[0].mxu0 }
 0x170   : > { %v676_v51 = vpop.f32.mrb[1].mxu0 }
 0x171   : > { %v677_v53 = vadd.f32 %v676_v51, %v675_v50 }
 0x173   : > { %v419_v54 = vadd.f32 %v677_v53, %v633_v52 }
 0x175   : > { %v422_v55 = vmax.f32 %v419_v54, 0.0 }
 0x177   : > { %423 = vadd.xlane.f32.xlu0 %v422_v55 }
 0x204   : > { %v424_v56 = vpop.xlane.xlu0 %423 }
 0x205   : > { %v426_v57 = vmul.f32 0.0078125, %v424_v56 }
 0x207   : > { %v427_v58 = vsub.f32 %v422_v55, %v426_v57 }
 0x209   : > { %v428_v59 = vmul.f32 %v427_v58, %v427_v58 }
 0x20b   : > { %429 = vadd.xlane.f32.xlu0 %v428_v59 }
 0x298   : > { %v430_v62 = vpop.xlane.xlu0 %429 }
 0x299   : > { %v431_v63 = vmul.f32 0.0078125, %v430_v62 }
 0x29b   : > { %v432_v0 = vadd.f32 1e-05, %v431_v63 }
 0x29d   : > { %779 = vrsqrt.f32 %v432_v0 }
 0x29e   : > { %781 = vrsqrt.f32 %v307_v9 }
 0x2a7   : > { %v780_v1 = vpop.eup %779 }
 0x2a8   : > { %v434_v3 = vmul.f32 %v780_v1, %v427_v58  ;;  %v782_v10 = vpop.eup %781 }
 0x2a9   : > { %v309_v11 = vmul.f32 %v782_v10, %v303_v60 }
 0x2aa   : > { %v439_v5 = vmul.f32 %v634_v2, %v434_v3 }
 0x2ab   : > { %310 = vst [vmem:[%s295_s11] sm:$0xff] %v309_v11 }
 0x2ac   : > { %v444_v6 = vadd.f32 %v635_v4, %v439_v5 }
 0x2ae   : > { %v445_v8 = vmul.f32 %v444_v6, %v444_v6 }
 0x2b0   : > { %446 = vadd.xlane.f32.xlu1 %v445_v8 }
 0x2b1   : > { %886 = shalt.err (!%p883_p1)
}
 0x2b2   : > { %s887_s13 = scalar_lea.hbm %s1222_s26, 128  ;;  %s891_s15 = scalar_lea.hbm %s1295_s4, 512 }
 0x2b3   : > { %p888_p6 = scmp.ne.s32.totalorder %s1222_s26, %s887_s13  ;;  %p892_p12 = scmp.lt.u32.totalorder %s1222_s26, %s1295_s4 }
 0x2b4   : > { %p893_p10 = scmp.lt.u32.totalorder %s891_s15, %s887_s13  ;;  %p895_p11 = scmp.lt.u32.totalorder %s887_s13, %s1222_s26 }
 0x2b5   : > { %p889_p8 = pnand %p888_p6, %p1314_p13 }
 0x2b6   : > { %p894_p0 = por %p893_p10, %p892_p12 }
 0x2b7   : > { %p890_p4 = pneg %p889_p8 }
 0x2b8   : > { %p896_p3 = por %p895_p11, %p894_p0 }
 0x2ba   : > { %p897_p7 = pnand %p896_p3, %p890_p4 }
 0x2bc   : > { %900 = shalt.err (!%p897_p7)
}
 0x2bd   : > { %718 = dma.vmem_to_hbm [thread:$0]  (%p1314_p13), %s472_s28, 128, %s1222_s26, %s453_s14  }
 0x2be   : > { %s302_s7 = scalar_lea.vmem [#allocation9], %s1182_s12  ;;  %s1248_s27 = scalar_lea.hbm %s1296_s5, %s638_s17 }
 0x2bf   : > { %s484_s6 = sshll.u32 %s302_s7, 4  ;;  %s458_s28 = scalar_lea.sflag [#allocation10], %s1179_s0  ;;  %s1250_s6 = int_to_ptr.vmem [resolvable:$true] %s484_s6 }
 0x2c0   : > { %s901_s26 = scalar_lea.vmem %s1250_s6, 128  ;;  %s987_s12 = smov [#allocation9]  }
 0x2c1   : > { %p902_p9 = scmp.ne.s32.totalorder %s1250_s6, %s901_s26  ;;  %s905_s14 = sshll.u32 %s987_s12, 4  ;;  %s906_s14 = int_to_ptr.vmem [resolvable:$false] %s905_s14 }
 0x2c2   : > { %s907_s22 = scalar_lea.vmem %s906_s14, 256  ;;  %p908_p1 = scmp.lt.s32.totalorder %s1250_s6, %s906_s14 }
 0x2c3   : > { %p903_p2 = pnand %p902_p9, %p1314_p13  ;;  %p909_p6 = scmp.lt.s32.totalorder %s907_s22, %s901_s26 }
 0x2c5   : > { %p904_p5 = pneg %p903_p2  ;;  %p910_p8 = por %p909_p6, %p908_p1 }
 0x2c7   : > { %p911_p4 = pnand %p910_p8, %p904_p5 }
 0x33d   : > { %v447_v12 = vpop.xlane.xlu1 %446 }
 0x33e   : > { %v448_v13 = vmax.f32 %v447_v12, 1e-24 }
 0x340   : > { %783 = vrsqrt.f32 %v448_v13 }
 0x34a   : > { %v784_v14 = vpop.eup %783 }
 0x34b   : > { %v450_v15 = vmul.f32 %v784_v14, %v444_v6 }
 0x34d   : > { %451 = vst [vmem:[%s302_s7] sm:$0xff] %v450_v15 }
 0x34e   : > { %914 = shalt.err (!%p911_p4)
}
 0x34f   : > { %s915_s0 = scalar_lea.hbm %s1248_s27, 128  ;;  %s919_s16 = scalar_lea.hbm %s1296_s5, 512 }
 0x350   : > { %p916_p12 = scmp.ne.s32.totalorder %s1248_s27, %s915_s0  ;;  %p920_p11 = scmp.lt.u32.totalorder %s1248_s27, %s1296_s5 }
 0x351   : > { %p921_p3 = scmp.lt.u32.totalorder %s919_s16, %s915_s0  ;;  %p923_p9 = scmp.lt.u32.totalorder %s915_s0, %s1248_s27 }
 0x352   : > { %p917_p10 = pnand %p916_p12, %p1314_p13 }
 0x353   : > { %p922_p7 = por %p921_p3, %p920_p11 }
 0x354   : > { %p918_p0 = pneg %p917_p10 }
 0x355   : > { %p924_p2 = por %p923_p9, %p922_p7 }
 0x357   : > { %p925_p5 = pnand %p924_p2, %p918_p0 }
 0x359   : > { %928 = shalt.err (!%p925_p5)
}
 0x35a   : > { %719 = dma.vmem_to_hbm [thread:$0]  (%p1314_p13), %s1250_s6, 128, %s1248_s27, %s458_s28  }
 0x35b PF: > { %p743_p1 = scmp.ge.s32.totalorder %s979_s21, 2  ;;  %s496_s11 = sand.u32 1, %s967_s18  }
 0x35c   : > { %p1315_p6 = scmp.ne.s32.totalorder %s1303_s25, 0  ;;  %s497_s10 = scalar_lea.sflag [#allocation4], %s496_s11 }
 0x35e   : > { %p734_p8 = pnand %p743_p1, %p1315_p6 }
 0x360   : > { %958 = dma.done.wait (!%p734_p8), %s497_s10, 128  }
 0x361   : > { %960 = vsyncadd (!%p734_p8), %s497_s10, 4294967168  ;;  %s506_s7 = scalar_lea.sflag [#allocation10], %s496_s11 }
 0x362   : > { %962 = dma.done.wait (!%p734_p8), %s506_s7, 128  }
 0x363   : > { %964 = vsyncadd (!%p734_p8), %s506_s7, 4294967168  ;;  %p25_p13 = scmp.ge.s32.totalorder %s1071_s30, 6   ;;  %s1316_s18 = smov %s971_s19 }
 0x364   : > { %s1317_s19 = smov %s975_s20  ;;  %s1318_s20 = smov %s1097_s8 }
 0x365   : > { %s1319_s21 = smov %s1071_s30  ;;  %27 = sbr.rel (!%p25_p13) target bundleno = 11 (0xb), region = 115 }
 0x36c   :  { %511 = vsyncpa [#allocation3], 1 }
 0x36d   :  { %513 = vsyncpa [#allocation3 + $0x1], 1 }
 0x36e   :  { %514 = vsyncpa [#allocation6], 1 }
 0x36f   :  { %516 = vsyncpa [#allocation6 + $0x1], 1 }
 0x370   :  { %517 = vsyncpa [#allocation4], 1 }
 0x371   :  { %519 = vsyncpa [#allocation4 + $0x1], 1 }
 0x372   :  { %520 = vsyncpa [#allocation10], 1 }
 0x373   :  { %522 = vsyncpa [#allocation10 + $0x1], 1 }

</bundles_post_ra>
